<compile_context>
chip_gen: v5e
topology: v5e:2x2
jax: 0.10.0
libtpu: 0.0.40
codegen_flags: <defaults>
</compile_context>

<pallas_src>
import functools

import jax
import jax.numpy as jnp
from jax.experimental import pallas as pl
from jax.experimental.pallas import tpu as pltpu


# ------------------------------------------------------------------
# Small helpers
# ------------------------------------------------------------------
def _round_up(x, m):
    return ((x + m - 1) // m) * m


@functools.lru_cache(maxsize=None)
def _vmem_limit_bytes():
    """Generation-aware scoped-VMEM limit: capacity minus headroom, capped at 100 MiB."""
    cap = 128 * 1024 * 1024
    try:
        info = pltpu.get_tpu_info()
        cap = int(getattr(info, "vmem_capacity_bytes", cap))
    except Exception:
        pass
    return int(max(32 * 1024 * 1024, min(cap - 16 * 1024 * 1024, 100 * 1024 * 1024)))


_BUFFERED_OK = None


def _probe_buffered_ok():
    """Check once whether pipeline_mode=pl.Buffered(1) is accepted on this jax/TPU."""
    def probe_kernel(x_ref, o_ref):
        o_ref[...] = x_ref[...] + 1.0

    try:
        spec = pl.BlockSpec((8, 128), lambda i: (0, 0), pipeline_mode=pl.Buffered(1))
        out = pl.pallas_call(
            probe_kernel,
            out_shape=jax.ShapeDtypeStruct((8, 128), jnp.float32),
            grid=(2,),
            in_specs=[spec],
            out_specs=pl.BlockSpec((8, 128), lambda i: (0, 0)),
        )(jnp.zeros((8, 128), jnp.float32))
        out = jax.block_until_ready(out)
        return bool(jnp.all(out == 1.0))
    except Exception:
        return False


def _const_spec(shape, index_map):
    """BlockSpec for a grid-invariant operand: single-buffered when supported (halves
    the resident-weight VMEM vs. the default double buffering)."""
    global _BUFFERED_OK
    if _BUFFERED_OK is None:
        _BUFFERED_OK = _probe_buffered_ok()
    if _BUFFERED_OK:
        return pl.BlockSpec(shape, index_map, pipeline_mode=pl.Buffered(1))
    return pl.BlockSpec(shape, index_map)


def _rmsnorm(h, w, eps=1e-6):
    # InternVideo2 RMSNorm (fp32 math): x * rsqrt(mean(x^2) + eps) * weight
    var = jnp.mean(h * h, axis=-1, keepdims=True)
    return (h * jax.lax.rsqrt(var + eps)) * w


# ------------------------------------------------------------------
# Patch-embedding projection: tiled (M, K) @ (K, D) + (1, D)
# ------------------------------------------------------------------
def _patch_embed_kernel(x_ref, w_ref, b_ref, o_ref):
    x = x_ref[...].astype(jnp.bfloat16)                    # cast in-kernel (no host pad/copy)
    o_ref[...] = (jnp.dot(x, w_ref[...], preferred_element_type=jnp.float32)
                  + b_ref[...]).astype(o_ref.dtype)


def patch_embed_matmul(patches, w_bf16, b_f32):
    """patches: (M, K) f32 (unpadded); w: (K, D) bf16; b: (1, D) f32 -> (M, D) f32."""
    M, K = patches.shape
    D = w_bf16.shape[1]
    tm = next((t for t in (512, 256, 128, 64, 32, 16, 8) if M % t == 0), None)
    if tm is None:
        tm = _round_up(M, 8)        # ragged trailing block handled by Pallas masking
    grid_m = pl.cdiv(M, tm)
    return pl.pallas_call(
        _patch_embed_kernel,
        out_shape=jax.ShapeDtypeStruct((M, D), jnp.float32),
        grid=(grid_m,),
        in_specs=[
            pl.BlockSpec((tm, K), lambda i: (i, 0)),       # full-K last dim (== array dim)
            _const_spec((K, D), lambda i: (0, 0)),
            _const_spec((1, D), lambda i: (0, 0)),
        ],
        out_specs=pl.BlockSpec((tm, D), lambda i: (i, 0)),
        compiler_params=pltpu.CompilerParams(
            dimension_semantics=("parallel",),
            vmem_limit_bytes=_vmem_limit_bytes()),
    )(patches, w_bf16, b_f32)


# ------------------------------------------------------------------
# Kernel 1: norm1 + QKV + QK-RMSNorm  ->  q/k/v in (B, H, N, dh) layout (bf16)
# ------------------------------------------------------------------
def _qkv_kernel(x_ref, n1_ref, wqkv_ref, qn_ref, kn_ref,
                q_ref, k_ref, v_ref, *, num_heads, scale):
    x = x_ref[0]                                           # (tn, D) f32 residual stream
    tn, D = x.shape
    H = num_heads
    dh = D // H

    h = _rmsnorm(x, n1_ref[...]).astype(jnp.bfloat16)
    qkv = jnp.dot(h, wqkv_ref[...], preferred_element_type=jnp.float32)    # (tn, 3D) f32

    # qk_normalization=True: RMSNorm over the flattened head dim, scale folded into q
    q = (_rmsnorm(qkv[:, :D], qn_ref[...]) * scale).astype(jnp.bfloat16)
    k = _rmsnorm(qkv[:, D:2 * D], kn_ref[...]).astype(jnp.bfloat16)
    v = qkv[:, 2 * D:].astype(jnp.bfloat16)

    # one tile-local relayout per q/k/v here so the attention kernel is transpose-free
    q_ref[0] = jnp.transpose(q.reshape(tn, H, dh), (1, 0, 2))
    k_ref[0] = jnp.transpose(k.reshape(tn, H, dh), (1, 0, 2))
    v_ref[0] = jnp.transpose(v.reshape(tn, H, dh), (1, 0, 2))


def run_qkv(x, blk, num_heads, *, tn):
    B, Np, D = x.shape
    H = num_heads
    dh = D // H
    scale = dh ** -0.5
    qkv_shape = jax.ShapeDtypeStruct((B, H, Np, dh), jnp.bfloat16)
    head_spec = pl.BlockSpec((1, H, tn, dh), lambda b, i: (b, 0, i, 0))
    return pl.pallas_call(
        functools.partial(_qkv_kernel, num_heads=num_heads, scale=scale),
        out_shape=(qkv_shape, qkv_shape, qkv_shape),
        grid=(B, Np // tn),
        in_specs=[
            pl.BlockSpec((1, tn, D), lambda b, i: (b, i, 0)),
            _const_spec((1, D), lambda b, i: (0, 0)),       # norm1 weight
            _const_spec((D, 3 * D), lambda b, i: (0, 0)),   # qkv weight (bf16)
            _const_spec((1, D), lambda b, i: (0, 0)),       # q_norm weight
            _const_spec((1, D), lambda b, i: (0, 0)),       # k_norm weight
        ],
        out_specs=(head_spec, head_spec, head_spec),
        compiler_params=pltpu.CompilerParams(
            dimension_semantics=("parallel", "parallel"),
            vmem_limit_bytes=_vmem_limit_bytes()),
    )(x, blk["norm1_w"], blk["qkv_w"], blk["q_norm_w"], blk["k_norm_w"])


# ------------------------------------------------------------------
# Kernel 2: flash attention over (B, H, q-tile) with kv as the 'arbitrary' axis
# ------------------------------------------------------------------
def _flash_attn_kernel(q_ref, k_ref, v_ref, o_ref, m_sc, l_sc, acc_sc,
                       *, kv_tile, n_valid):
    ki = pl.program_id(3)

    @pl.when(ki == 0)
    def _():
        m_sc[...] = jnp.full_like(m_sc, -jnp.inf)
        l_sc[...] = jnp.zeros_like(l_sc)
        acc_sc[...] = jnp.zeros_like(acc_sc)

    q = q_ref[0, 0]                                        # (tq, dh) bf16, pre-scaled
    k = k_ref[0, 0]                                        # (tkv, dh) bf16
    v = v_ref[0, 0]                                        # (tkv, dh) bf16

    s = jnp.dot(q, k.T, preferred_element_type=jnp.float32)          # (tq, tkv) f32
    # mask padded key positions (N was padded up to a multiple of the kv tile)
    kv_pos = ki * kv_tile + jax.lax.broadcasted_iota(jnp.int32, s.shape, 1)
    s = jnp.where(kv_pos < n_valid, s, -1e30)

    m_prev = m_sc[...]
    m_new = jnp.maximum(m_prev, jnp.max(s, axis=-1, keepdims=True))
    alpha = jnp.exp(m_prev - m_new)
    p = jnp.exp(s - m_new)
    l_sc[...] = alpha * l_sc[...] + jnp.sum(p, axis=-1, keepdims=True)
    acc_sc[...] = alpha * acc_sc[...] + jnp.dot(
        p.astype(jnp.bfloat16), v, preferred_element_type=jnp.float32)
    m_sc[...] = m_new

    @pl.when(ki == pl.num_programs(3) - 1)
    def _():
        o_ref[0, 0] = (acc_sc[...] *
                       pl.reciprocal(l_sc[...], approx=True)).astype(o_ref.dtype)


def run_attention(q, k, v, *, tq, tkv, n_valid):
    B, H, Np, dh = q.shape
    q_spec = pl.BlockSpec((1, 1, tq, dh), lambda b, h, qi, ki: (b, h, qi, 0))
    kv_spec = pl.BlockSpec((1, 1, tkv, dh), lambda b, h, qi, ki: (b, h, ki, 0))
    return pl.pallas_call(
        functools.partial(_flash_attn_kernel, kv_tile=tkv, n_valid=n_valid),
        out_shape=jax.ShapeDtypeStruct((B, H, Np, dh), jnp.bfloat16),
        grid=(B, H, Np // tq, Np // tkv),
        in_specs=[q_spec, kv_spec, kv_spec],
        out_specs=pl.BlockSpec((1, 1, tq, dh), lambda b, h, qi, ki: (b, h, qi, 0)),
        scratch_shapes=[
            pltpu.VMEM((tq, 1), jnp.float32),              # running max
            pltpu.VMEM((tq, 1), jnp.float32),              # running denom
            pltpu.VMEM((tq, dh), jnp.float32),             # output accumulator
        ],
        compiler_params=pltpu.CompilerParams(
            dimension_semantics=("parallel", "parallel", "parallel", "arbitrary"),
            vmem_limit_bytes=_vmem_limit_bytes()),
    )(q, k, v)


# ------------------------------------------------------------------
# Kernel 3: proj + LayerScale + residual + norm2 + MLP(GELU) + LayerScale + residual,
#           with fc1/fc2 streamed through the Hm grid axis
# ------------------------------------------------------------------
def _proj_mlp_kernel(x_ref, ctx_ref, wp_ref, bp_ref, g1_ref, n2_ref,
                     w1_ref, b1_ref, w2_ref, b2_ref, g2_ref, o_ref,
                     x1_sc, h2_sc, acc_sc):
    j = pl.program_id(2)

    @pl.when(j == 0)
    def _():
        ctx = ctx_ref[0]                                   # (H, tn, dh) bf16
        H, tn, dh = ctx.shape
        ctx2d = jnp.transpose(ctx, (1, 0, 2)).reshape(tn, H * dh)
        attn = jnp.dot(ctx2d, wp_ref[...],
                       preferred_element_type=jnp.float32) + bp_ref[...]
        x1 = x_ref[0] + g1_ref[...] * attn                 # LayerScale(gamma1) + residual
        x1_sc[...] = x1
        h2_sc[...] = _rmsnorm(x1, n2_ref[...]).astype(jnp.bfloat16)
        acc_sc[...] = jnp.zeros_like(acc_sc)

    hc = jnp.dot(h2_sc[...], w1_ref[...],
                 preferred_element_type=jnp.float32) + b1_ref[...]
    hc = jax.nn.gelu(hc, approximate=False)                # exact GELU (torch nn.GELU), f32
    acc_sc[...] += jnp.dot(hc.astype(jnp.bfloat16), w2_ref[...],
                           preferred_element_type=jnp.float32)

    @pl.when(j == pl.num_programs(2) - 1)
    def _():
        o_ref[0] = x1_sc[...] + g2_ref[...] * (acc_sc[...] + b2_ref[...])


def run_proj_mlp(x, ctx, blk, *, tn, hm_tile):
    B, Np, D = x.shape
    _, H, _, dh = ctx.shape
    Hm = blk["fc1_w"].shape[1]
    return pl.pallas_call(
        _proj_mlp_kernel,
        out_shape=jax.ShapeDtypeStruct((B, Np, D), jnp.float32),
        grid=(B, Np // tn, Hm // hm_tile),
        in_specs=[
            pl.BlockSpec((1, tn, D), lambda b, i, j: (b, i, 0)),        # residual tokens
            pl.BlockSpec((1, H, tn, dh), lambda b, i, j: (b, 0, i, 0)),  # attention ctx
            _const_spec((D, D), lambda b, i, j: (0, 0)),                 # proj weight
            _const_spec((1, D), lambda b, i, j: (0, 0)),                 # proj bias
            _const_spec((1, D), lambda b, i, j: (0, 0)),                 # gamma1
            _const_spec((1, D), lambda b, i, j: (0, 0)),                 # norm2 weight
            pl.BlockSpec((D, hm_tile), lambda b, i, j: (0, j)),          # fc1 W (streamed)
            pl.BlockSpec((1, hm_tile), lambda b, i, j: (0, j)),          # fc1 b (streamed)
            pl.BlockSpec((hm_tile, D), lambda b, i, j: (j, 0)),          # fc2 W (streamed)
            _const_spec((1, D), lambda b, i, j: (0, 0)),                 # fc2 bias
            _const_spec((1, D), lambda b, i, j: (0, 0)),                 # gamma2
        ],
        out_specs=pl.BlockSpec((1, tn, D), lambda b, i, j: (b, i, 0)),
        scratch_shapes=[
            pltpu.VMEM((tn, D), jnp.float32),              # x after attention branch
            pltpu.VMEM((tn, D), jnp.bfloat16),             # rmsnorm(x1), MLP input
            pltpu.VMEM((tn, D), jnp.float32),              # MLP accumulator
        ],
        compiler_params=pltpu.CompilerParams(
            dimension_semantics=("parallel", "parallel", "arbitrary"),
            vmem_limit_bytes=_vmem_limit_bytes()),
    )(x, ctx, blk["proj_w"], blk["proj_b"], blk["gamma1"], blk["norm2_w"],
      blk["fc1_w"], blk["fc1_b"], blk["fc2_w"], blk["fc2_b"], blk["gamma2"])


def run_block(x, blk, num_heads, *, n_valid, tn, tq, tkv, hm_tile):
    q, k, v = run_qkv(x, blk, num_heads, tn=tn)
    ctx = run_attention(q, k, v, tq=tq, tkv=tkv, n_valid=n_valid)
    return run_proj_mlp(x, ctx, blk, tn=tn, hm_tile=hm_tile)


# ------------------------------------------------------------------
# Forward pass (InternVideo2VisionTower.forward semantics)
# ------------------------------------------------------------------
def internvideo2_vision_tower_forward(images, params, cfg):
    """images: (B, T, C, H, W) float32. Returns (B, T*L, D) — CLS token dropped."""
    B, T, C, H, W = images.shape
    P = cfg["patch_size"]
    Hp, Wp = H // P, W // P
    L = Hp * Wp
    D = cfg["hidden_size"]

    # images.permute(0, 2, 1, 3, 4) -> (B, C, T, H, W); Conv3d(tubelet=1) == im2col matmul,
    # patches flattened channels-first (C, Ph, Pw) to match Conv3d weight layout.
    x = jnp.transpose(images, (0, 2, 1, 3, 4))
    x = x.reshape(B, C, T, Hp, P, Wp, P)
    x = jnp.transpose(x, (0, 2, 3, 5, 1, 4, 6))            # (B, T, Hp, Wp, C, P, P)
    patches = x.reshape(B * T * L, C * P * P)

    emb = patch_embed_matmul(patches, params["patch_w"], params["patch_b"])  # (B*T*L, D)
    emb = emb.reshape(B, T * L, D)

    # prepend CLS token, add positional embedding (video vs. image branch)
    cls = jnp.broadcast_to(params["cls_token"], (B, 1, D))
    tok = jnp.concatenate([cls, emb], axis=1)              # (B, 1+T*L, D)
    use_image = (T == 1)
    pos = params["img_pos_embed"] if use_image else params["pos_embed"]
    tok = tok + pos

    # pad the token axis to a multiple of 128 (dense lanes/sublanes, clean q/kv tiles);
    # padded KEY positions are masked inside the attention kernel, padded rows sliced off.
    n_valid = 1 + T * L
    n_pad = _round_up(n_valid, 128)
    tok = jnp.pad(tok, ((0, 0), (0, n_pad - n_valid), (0, 0)))

    tn = 256 if n_pad % 256 == 0 else 128
    tq = tkv = 128
    Hm = params["blocks"][0]["fc1_w"].shape[1]
    hm_tile = next((t for t in (1024, 512, 256, 128) if Hm % t == 0), Hm)

    # transformer blocks (x_vis_only=True -> output of block depth + x_vis_return_idx + 1)
    for blk in params["blocks"]:
        tok = run_block(tok, blk, cfg["num_heads"],
                        n_valid=n_valid, tn=tn, tq=tq, tkv=tkv, hm_tile=hm_tile)

    # InternVideo2VisionTower.forward: image_embeds[:, 1:, :]
    return tok[:, 1:n_valid, :]


# ------------------------------------------------------------------
# Deterministic synthetic parameters (bf16 matmul weights, f32 everything else)
# ------------------------------------------------------------------
def init_params(key, cfg):
    D = cfg["hidden_size"]
    C = cfg["num_channels"]
    P = cfg["patch_size"]
    T = cfg["num_frames"]
    Hp = cfg["image_size"] // P
    L = Hp * Hp
    Hm_true = int(D * cfg["mlp_ratio"])
    # zero-pad the MLP hidden dim to a multiple of 128: padded fc1 cols / fc2 rows are
    # exactly zero so the result is unchanged, but tiles are lane/sublane dense.
    Hm = _round_up(Hm_true, 128)
    n_blocks = cfg["num_hidden_layers"] + cfg["x_vis_return_idx"] + 1   # e.g. 40 - 2 + 1

    def nrm(k, shape, dtype=jnp.float32, scale=0.02):
        return (scale * jax.random.normal(k, shape, jnp.float32)).astype(dtype)

    keys = jax.random.split(key, 5 + n_blocks)
    params = {
        "patch_w": nrm(keys[0], (C * P * P, D), jnp.bfloat16),
        "patch_b": nrm(keys[1], (1, D)),
        "cls_token": nrm(keys[2], (1, 1, D)),
        "pos_embed": nrm(keys[3], (1, T * L + 1, D)),      # video pos embed
        "img_pos_embed": nrm(keys[4], (1, L + 1, D)),      # sep_image_video_pos_embed=True
        "blocks": [],
    }
    for i in range(n_blocks):
        bk = jax.random.split(keys[5 + i], 6)
        fc1_w = jnp.zeros((D, Hm), jnp.bfloat16).at[:, :Hm_true].set(
            nrm(bk[3], (D, Hm_true), jnp.bfloat16))
        fc1_b = jnp.zeros((1, Hm), jnp.float32).at[:, :Hm_true].set(
            nrm(bk[4], (1, Hm_true)))
        fc2_w = jnp.zeros((Hm, D), jnp.bfloat16).at[:Hm_true, :].set(
            nrm(bk[5], (Hm_true, D), jnp.bfloat16))
        params["blocks"].append({
            "norm1_w": jnp.ones((1, D), jnp.float32),
            "qkv_w": nrm(bk[0], (D, 3 * D), jnp.bfloat16),   # qkv_bias=False
            "q_norm_w": jnp.ones((1, D), jnp.float32),
            "k_norm_w": jnp.ones((1, D), jnp.float32),
            "proj_w": nrm(bk[1], (D, D), jnp.bfloat16),
            "proj_b": nrm(bk[2], (1, D)),
            "gamma1": 1e-5 * jnp.ones((1, D), jnp.float32),  # LayerScale init_values=1e-5
            "norm2_w": jnp.ones((1, D), jnp.float32),
            "fc1_w": fc1_w,
            "fc1_b": fc1_b,
            "fc2_w": fc2_w,
            "fc2_b": jnp.zeros((1, D), jnp.float32),
            "gamma2": 1e-5 * jnp.ones((1, D), jnp.float32),
        })
    return params


# ------------------------------------------------------------------
if __name__ == "__main__":
    # Small synthetic config consistent with the module's structure
    # (hidden_size >= 128 so the lane axis is fully populated).
    cfg = {
        "num_frames": 2,
        "num_channels": 3,
        "image_size": 28,
        "patch_size": 14,
        "hidden_size": 128,
        "num_heads": 4,
        "mlp_ratio": 48.0 / 11.0,
        "num_hidden_layers": 4,
        "x_vis_return_idx": -2,      # -> 3 blocks actually run
    }

    key = jax.random.PRNGKey(0)
    pkey, xkey = jax.random.split(key)
    params = init_params(pkey, cfg)

    B, T = 2, cfg["num_frames"]
    images = jax.random.normal(
        xkey, (B, T, cfg["num_channels"], cfg["image_size"], cfg["image_size"]),
        jnp.float32)

    out = internvideo2_vision_tower_forward(images, params, cfg)
    out = jax.block_until_ready(out)

    Hp = cfg["image_size"] // cfg["patch_size"]
    expected = (B, T * Hp * Hp, cfg["hidden_size"])
    assert out.shape == expected, (out.shape, expected)
    assert bool(jnp.all(jnp.isfinite(out)))
    print("KERNEL_OK")
</pallas_src>

<mosaic_0001>
module attributes {stable_mosaic.version = 11 : i64} {
  func.func @probe_kernel(%arg0: i32, %arg1: memref<8x128xf32, #tpu.memory_space<vmem>>, %arg2: memref<8x128xf32, #tpu.memory_space<vmem>>) attributes {dimension_semantics = [#tpu.dimension_semantics<arbitrary>], iteration_bounds = array<i64: 2>, scalar_prefetch = 0 : i64, scratch_operands = 0 : i64, tpu.core_type = #tpu.core_type<tc>, window_params = [{pipeline_mode = #tpu.pipeline_mode<synchronous>, transform_indices = @transform_0, window_bounds = array<i64: 8, 128>}, {pipeline_mode = #tpu.pipeline_mode<synchronous>, transform_indices = @transform_1, window_bounds = array<i64: 8, 128>}]} {
    %c0 = arith.constant 0 : index
    %c0_0 = arith.constant 0 : index
    %0 = vector.load %arg1[%c0, %c0_0] : memref<8x128xf32, #tpu.memory_space<vmem>>, vector<8x128xf32>
    %cst = arith.constant 1.000000e+00 : f32
    %1 = vector.broadcast %cst : f32 to vector<8x128xf32>
    %2 = arith.addf %0, %1 : vector<8x128xf32>
    %c0_1 = arith.constant 0 : index
    %c0_2 = arith.constant 0 : index
    %3 = vector.load %arg2[%c0_1, %c0_2] : memref<8x128xf32, #tpu.memory_space<vmem>>, vector<8x128xf32>
    tpu.vector_store %arg2[%c0_1, %c0_2], %2 {strides = array<i32>} : memref<8x128xf32, #tpu.memory_space<vmem>>, vector<8x128xf32>,
    return
  }
  func.func @transform_0(%arg0: i32) -> (i32, i32) {
    %c0_i32 = arith.constant 0 : i32
    %c0_i32_0 = arith.constant 0 : i32
    %c0_i32_1 = arith.constant 0 : i32
    return %c0_i32, %c0_i32_0 : i32, i32
  }
  func.func @transform_1(%arg0: i32) -> (i32, i32) {
    %c0_i32 = arith.constant 0 : i32
    %c0_i32_0 = arith.constant 0 : i32
    %c0_i32_1 = arith.constant 0 : i32
    return %c0_i32, %c0_i32_0 : i32, i32
  }
}

module attributes {stable_mosaic.version = 11 : i64} {
  func.func @_patch_embed_kernel(%arg0: i32, %arg1: memref<16x588xf32, #tpu.memory_space<vmem>>, %arg2: memref<588x128xbf16, #tpu.memory_space<vmem>>, %arg3: memref<1x128xf32, #tpu.memory_space<vmem>>, %arg4: memref<16x128xf32, #tpu.memory_space<vmem>>) attributes {dimension_semantics = [#tpu.dimension_semantics<parallel>], iteration_bounds = array<i64: 1>, scalar_prefetch = 0 : i64, scratch_operands = 0 : i64, tpu.core_type = #tpu.core_type<tc>, window_params = [{transform_indices = @transform_0, window_bounds = array<i64: 16, 588>}, {pipeline_mode = #tpu.pipeline_mode<synchronous>, transform_indices = @transform_1, window_bounds = array<i64: 588, 128>}, {pipeline_mode = #tpu.pipeline_mode<synchronous>, transform_indices = @transform_2, window_bounds = array<i64: 1, 128>}, {transform_indices = @transform_3, window_bounds = array<i64: 16, 128>}]} {
    %c0 = arith.constant 0 : index
    %c0_0 = arith.constant 0 : index
    %0 = vector.load %arg1[%c0, %c0_0] : memref<16x588xf32, #tpu.memory_space<vmem>>, vector<16x588xf32>
    %1 = arith.truncf %0 : vector<16x588xf32> to vector<16x588xbf16>
    %c0_1 = arith.constant 0 : index
    %c0_2 = arith.constant 0 : index
    %2 = vector.load %arg2[%c0_1, %c0_2] : memref<588x128xbf16, #tpu.memory_space<vmem>>, vector<588x128xbf16>
    %cst = arith.constant dense<0.000000e+00> : vector<16x128xf32>
    %3 = tpu.matmul %1, %2, %cst {dimension_numbers = #tpu.dot_dimension_numbers<[1], [0], [0], [1], [0, 0, 1, 1], [], []>} : vector<16x588xbf16>, vector<588x128xbf16>, vector<16x128xf32> -> vector<16x128xf32>
    %c0_3 = arith.constant 0 : index
    %c0_4 = arith.constant 0 : index
    %4 = vector.load %arg3[%c0_3, %c0_4] : memref<1x128xf32, #tpu.memory_space<vmem>>, vector<1x128xf32>
    %5 = vector.broadcast %4 : vector<1x128xf32> to vector<16x128xf32>
    %6 = arith.addf %3, %5 : vector<16x128xf32>
    %c0_5 = arith.constant 0 : index
    %c0_6 = arith.constant 0 : index
    %7 = vector.load %arg4[%c0_5, %c0_6] : memref<16x128xf32, #tpu.memory_space<vmem>>, vector<16x128xf32>
    tpu.vector_store %arg4[%c0_5, %c0_6], %6 {strides = array<i32>} : memref<16x128xf32, #tpu.memory_space<vmem>>, vector<16x128xf32>,
    return
  }
  func.func @transform_0(%arg0: i32) -> (i32, i32) {
    %c0_i32 = arith.constant 0 : i32
    %c0_i32_0 = arith.constant 0 : i32
    return %arg0, %c0_i32 : i32, i32
  }
  func.func @transform_1(%arg0: i32) -> (i32, i32) {
    %c0_i32 = arith.constant 0 : i32
    %c0_i32_0 = arith.constant 0 : i32
    %c0_i32_1 = arith.constant 0 : i32
    return %c0_i32, %c0_i32_0 : i32, i32
  }
  func.func @transform_2(%arg0: i32) -> (i32, i32) {
    %c0_i32 = arith.constant 0 : i32
    %c0_i32_0 = arith.constant 0 : i32
    %c0_i32_1 = arith.constant 0 : i32
    return %c0_i32, %c0_i32_0 : i32, i32
  }
  func.func @transform_3(%arg0: i32) -> (i32, i32) {
    %c0_i32 = arith.constant 0 : i32
    %c0_i32_0 = arith.constant 0 : i32
    return %arg0, %c0_i32 : i32, i32
  }
}

</mosaic_0001>

<bundles_post_ra>
// kernel: tpu_custom_call.1
= control target key start
LH: loop header
LB: loop body
LE: loop exit
PB: predicated region body
PF: predicated region fallthrough
CT: control target
= control target key end

     0   :  { %6 = vsyncpa [#allocation3], 0  ;;  %s287_s0 = inlined_call_operand.hbm [shape: f32[8,128], index: 0, kind: input, shape index: {}]   ;;  %s288_s1 = inlined_call_operand.hbm [shape: f32[8,128], index: 1, kind: output, shape index: {}]  }
   0x1   :  { %7 = vsyncpa [#allocation4], 0  ;;  %s270_s6 = smov 0  }
   0x2 LB: > { %s149_s7 = sadd.s32 4294967295, %s256_s6   ;;  %p150_p0 = scmp.ge.s32.totalorder %s256_s6, 1  ;;  %s256_s6 = sphi %s270_s6, %s13_s6  }
   0x3   : > { %p60_p1 = scmp.lt.s32.totalorder %s256_s6, 3  ;;  %s72_s10 = sshll.u32 %s287_s0, 4  ;;  %s73_s10 = int_to_ptr.hbm [resolvable:$true] %s72_s10 }
   0x4   : > { %p170_p3 = scmp.eq.s32.totalorder %s149_s7, 0  ;;  %s258_s11 = smov [#allocation2]  }
   0x5   : > { %p61_p2 = pnand %p150_p0, %p60_p1  ;;  %s74_s12 = sshll.u32 %s258_s11, 4  ;;  %s75_s12 = int_to_ptr.vmem [resolvable:$true] %s74_s12 }
   0x7   : > { %p166_p4 = pneg %p61_p2  ;;  %87 = sbr.rel (%p61_p2) target bundleno = 20 (0x14), region = 24 }
   0x9   : > { %p167_p5 = pnand %p170_p3, %p166_p4 }
   0xb   : > { %169 = dma.hbm_to_vmem [thread:$0]  (!%p167_p5), %s73_s10, 128, %s75_s12, [#allocation3]  }
   0xc   : > { %247 = dma.done.wait (%p170_p3), [#allocation3], 128  }
   0xd   : > { %249 = vsyncadd (%p170_p3), [#allocation3], 4294967168  ;;  %s259_s13 = smov [#allocation5]   ;;  %s109_s17 = sshll.u32 %s288_s1, 4  ;;  %v98_v0 = vld [vmem:[#allocation2] sm:$0xff]  ;;  %s110_s17 = int_to_ptr.hbm [resolvable:$true] %s109_s17 }
   0xe   : > { %s107_s14 = sshll.u32 %s259_s13, 4  ;;  %p172_p6 = scmp.eq.s32.totalorder %s149_s7, 1  ;;  %v99_v1 = vadd.f32 1.0, %v98_v0  ;;  %s108_s14 = int_to_ptr.vmem [resolvable:$true] %s107_s14 }
  0x10   : > { %100 = vst [vmem:[#allocation5] sm:$0xff] %v99_v1 }
  0x11   : > { %163 = dma.vmem_to_hbm [thread:$0]  (%p172_p6), %s108_s14, 128, %s110_s17, [#allocation4]  }
  0x12   : > { %251 = dma.done.wait (%p172_p6), [#allocation4], 128  }
  0x13   : > { %253 = vsyncadd (%p172_p6), [#allocation4], 4294967168 }
  0x14 PF: > { %s13_s6 = sadd.s32 1, %s256_s6  }
  0x15   : > { %p10_p7 = scmp.ge.s32.totalorder %s13_s6, 4  }
  0x17   :  { %12 = sbr.rel (!%p10_p7) target bundleno = 2 (0x2), region = 53 }
  0x1c   :  { %123 = vsyncpa [#allocation3], 1 }
  0x1d   :  { %125 = vsyncpa [#allocation3 + $0x1], 1 }
  0x1e   :  { %126 = vsyncpa [#allocation4], 1 }
  0x1f   :  { %128 = vsyncpa [#allocation4 + $0x1], 1 }

// kernel: tpu_custom_call.1
= control target key start
LH: loop header
LB: loop body
LE: loop exit
PB: predicated region body
PF: predicated region fallthrough
CT: control target
= control target key end

     0   :  { %8 = vsyncpa [#allocation3], 0  ;;  %s777_s0 = inlined_call_operand.hbm [shape: f32[16,588], index: 0, kind: input, shape index: {}]   ;;  %s778_s1 = inlined_call_operand.hbm [shape: bf16[588,128], index: 1, kind: input, shape index: {}]   ;;  %s779_s2 = inlined_call_operand.vmem [shape: f32[1,128], index: 2, kind: input, shape index: {}]   ;;  %s780_s3 = inlined_call_operand.hbm [shape: f32[16,128], index: 3, kind: output, shape index: {}]  }
   0x1   :  { %9 = vsyncpa [#allocation6], 0 }
   0x2   :  { %10 = vsyncpa [#allocation4], 0  ;;  %s15_s14 = sshll.u32 %s777_s0, 4  ;;  %s736_s15 = smov [#allocation2]   ;;  %s16_s14 = int_to_ptr.hbm [resolvable:$true] %s15_s14 }
   0x3   :  { %s17_s16 = sshll.u32 %s736_s15, 4  ;;  %s28_s19 = sshll.u32 %s778_s1, 4  ;;  %s18_s16 = int_to_ptr.vmem [resolvable:$true] %s17_s16  ;;  %s29_s19 = int_to_ptr.hbm [resolvable:$true] %s28_s19 }
   0x4   :  { %s737_s20 = smov 640   ;;  %s738_s21 = smov 40  }
   0x5   :  { %23 = dma.hbm_to_vmem [thread:$0]  %s16_s14, 1280, %s18_s16, [#allocation3], %s737_s20, %s737_s20, %s738_s21  }
   0x6   :  { %s739_s22 = smov [#allocation5]   ;;  %s740_s24 = smov 64  }
   0x7   :  { %s30_s23 = sshll.u32 %s739_s22, 4  ;;  %s741_s25 = smov 4   ;;  %s31_s23 = int_to_ptr.vmem [resolvable:$true] %s30_s23 }
   0x8   :  { %36 = dma.hbm_to_vmem [thread:$0]  %s29_s19, 4736, %s31_s23, [#allocation6], %s740_s24, %s740_s24, %s741_s25  }
   0x9   :  { %730 = dma.done.wait [#allocation3], 1280  }
   0xa   :  { %731 = vsyncadd [#allocation3], 4294966016 }
   0xb   :  { %732 = dma.done.wait [#allocation6], 4736  }
   0xc   :  { %733 = vsyncadd [#allocation6], 4294962560  ;;  %v618_v0 = vld [vmem:[#allocation5 + $0x38] sm:$0xff]  ;;  %v617_v4 = vld [vmem:[#allocation5 + $0x30] sm:$0xff]  ;;  %vm366_vm0 = vcmask 1045504   ;;  %vm362_vm1 = vcmask 621568  }
   0xd   :  { %v634_v1 = vld [vmem:[#allocation5 + $0xb8] sm:$0xff]  ;;  %370 = vmatpush.bf16.msra.mxu0 %v618_v0  ;;  %v633_v5 = vld [vmem:[#allocation5 + $0xb0] sm:$0xff]  ;;  %v616_v8 = vld [vmem:[#allocation5 + $0x28] sm:$0xff]  ;;  %s742_s26 = smov [#allocation7]   ;;  %s448_s29 = sshll.u32 %s780_s3, 4  ;;  %s449_s29 = int_to_ptr.hbm [resolvable:$true] %s448_s29 }
   0xe   :  { %v642_v2 = vld [vmem:[#allocation5 + $0xf8] sm:$0xff]  ;;  %398 = vmatpush.bf16.msra.mxu2 %v634_v1  ;;  %v641_v6 = vld [vmem:[#allocation5 + $0xf0] sm:$0xff]  ;;  %v632_v9 = vld [vmem:[#allocation5 + $0xa8] sm:$0xff]  ;;  %s743_s30 = smov 128   ;;  %s744_s4 = smov 8  }
   0xf   :  { %v626_v3 = vld [vmem:[#allocation5 + $0x78] sm:$0xff]  ;;  %412 = vmatpush.bf16.msra.mxu3 %v642_v2  ;;  %v625_v7 = vld [vmem:[#allocation5 + $0x70] sm:$0xff]  ;;  %v640_v10 = vld [vmem:[#allocation5 + $0xe8] sm:$0xff] }
  0x10   :  { %384 = vmatpush.bf16.msra.mxu1 %v626_v3  ;;  %v624_v11 = vld [vmem:[#allocation5 + $0x68] sm:$0xff]  ;;  %v615_v12 = vld [vmem:[#allocation5 + $0x20] sm:$0xff]  ;;  %v614_v16 = vld [vmem:[#allocation5 + $0x18] sm:$0xff] }
  0x11   :  { %371 = vmatpush.bf16.msra.mxu0 %v617_v4  ;;  %v631_v13 = vld [vmem:[#allocation5 + $0xa0] sm:$0xff]  ;;  %v630_v17 = vld [vmem:[#allocation5 + $0x98] sm:$0xff]  ;;  %v613_v20 = vld [vmem:[#allocation5 + $0x10] sm:$0xff] }
  0x12   :  { %399 = vmatpush.bf16.msra.mxu2 %v633_v5  ;;  %v639_v14 = vld [vmem:[#allocation5 + $0xe0] sm:$0xff]  ;;  %v638_v18 = vld [vmem:[#allocation5 + $0xd8] sm:$0xff]  ;;  %v629_v21 = vld [vmem:[#allocation5 + $0x90] sm:$0xff] }
  0x13   :  { %413 = vmatpush.bf16.msra.mxu3 %v641_v6  ;;  %v623_v15 = vld [vmem:[#allocation5 + $0x60] sm:$0xff]  ;;  %v622_v19 = vld [vmem:[#allocation5 + $0x58] sm:$0xff]  ;;  %v637_v22 = vld [vmem:[#allocation5 + $0xd0] sm:$0xff] }
  0x14   :  { %385 = vmatpush.bf16.msra.mxu1 %v625_v7  ;;  %v621_v23 = vld [vmem:[#allocation5 + $0x50] sm:$0xff]  ;;  %v608_v24 = vld [vmem:[#allocation5 + $0x120] sm:$0xf]  ;;  %v647_v25 = vld [vmem:[#allocation5 + $0x120] sm:$0x30] }
  0x15   :  { %372 = vmatpush.bf16.msra.mxu0 %v616_v8  ;;  %v612_v26 = vld [vmem:[#allocation5 + $0x8] sm:$0xff]  ;;  %v609_v30 = vor.u32 %v647_v25, %v608_v24  ;;  %v611_v31 = vld [vmem:[#allocation5] sm:$0xff]  ;;  %v48_v33 = vld [vmem:[#allocation2] sm:$0xff] }
  0x16   :  { %400 = vmatpush.bf16.msra.mxu2 %v632_v9  ;;  %v628_v27 = vld [vmem:[#allocation5 + $0x88] sm:$0xff]  ;;  %v627_v32 = vld [vmem:[#allocation5 + $0x80] sm:$0xff]  ;;  %v53_v34 = vld [vmem:[#allocation2 + $0x28] sm:$0xff] }
  0x17   :  { %414 = vmatpush.bf16.msra.mxu3 %v640_v10  ;;  %v636_v28 = vld [vmem:[#allocation5 + $0xc8] sm:$0xff]  ;;  %v50_v35 = vld [vmem:[#allocation2 + $0x10] sm:$0xff]  ;;  %v56_v39 = vld [vmem:[#allocation2 + $0x40] sm:$0xff]  ;;  %v368_v40 = vsel %vm366_vm0, %v609_v30, 0  ;;  %v58_v44 = vpack.c.bf16 %v53_v34, %v48_v33 }
  0x18   :  { %386 = vmatpush.bf16.msra.mxu1 %v624_v11  ;;  %v620_v29 = vld [vmem:[#allocation5 + $0x48] sm:$0xff]  ;;  %v635_v37 = vld [vmem:[#allocation5 + $0xc0] sm:$0xff]  ;;  %v49_v42 = vld [vmem:[#allocation2 + $0x8] sm:$0xff] }
  0x19   :  { %373 = vmatpush.bf16.msra.mxu0 %v615_v12  ;;  %v55_v36 = vld [vmem:[#allocation2 + $0x38] sm:$0xff]  ;;  %v619_v41 = vld [vmem:[#allocation5 + $0x40] sm:$0xff]  ;;  %v646_v48 = vld [vmem:[#allocation5 + $0x118] sm:$0xff] }
  0x1a   :  { %401 = vmatpush.bf16.msra.mxu2 %v631_v13  ;;  %v51_v38 = vld [vmem:[#allocation2 + $0x18] sm:$0xff]  ;;  %v54_v43 = vld [vmem:[#allocation2 + $0x30] sm:$0xff]  ;;  %v60_v45 = vpack.c.bf16 %v55_v36, %v50_v35  ;;  %v645_v49 = vld [vmem:[#allocation5 + $0x110] sm:$0xff] }
  0x1b   :  { %415 = vmatpush.bf16.msra.mxu3 %v639_v14  ;;  %v61_v46 = vpack.c.bf16 %v56_v39, %v51_v38  ;;  %v59_v47 = vpack.c.bf16 %v54_v43, %v49_v42  ;;  %v644_v50 = vld [vmem:[#allocation5 + $0x108] sm:$0xff]  ;;  %v643_v51 = vld [vmem:[#allocation5 + $0x100] sm:$0xff]  ;;  %v52_v52 = vld [vmem:[#allocation2 + $0x20] sm:$0xff] }
  0x1c   :  { %387 = vmatpush.bf16.msra.mxu1 %v623_v15  ;;  %v57_v53 = vld [vmem:[#allocation2 + $0x48] sm:$0xff]  ;;  %v657_v55 = vld [vmem:[%s779_s2] ss:$0 sm:$0xff]  ;;  %s446_s2 = sshll.u32 %s742_s26, 4  ;;  %s447_s2 = int_to_ptr.vmem [resolvable:$true] %s446_s2 }
  0x1d   :  { %374 = vmatpush.bf16.msra.mxu0 %v614_v16  ;;  %v62_v54 = vpack.c.bf16 %v57_v53, %v52_v52 }
  0x1e   :  { %402 = vmatpush.bf16.msra.mxu2 %v630_v17 }
  0x1f   :  { %416 = vmatpush.bf16.msra.mxu3 %v638_v18 }
  0x20   :  { %388 = vmatpush.bf16.msra.mxu1 %v622_v19 }
  0x21   :  { %375 = vmatpush.bf16.msra.mxu0 %v613_v20 }
  0x22   :  { %403 = vmatpush.bf16.msra.mxu2 %v629_v21 }
  0x23   :  { %417 = vmatpush.bf16.msra.mxu3 %v637_v22 }
  0x24   :  { %389 = vmatpush.bf16.msra.mxu1 %v621_v23 }
  0x25   :  { %376 = vmatpush.bf16.msra.mxu0 %v612_v26 }
  0x26   :  { %404 = vmatpush.bf16.msra.mxu2 %v628_v27 }
  0x27   :  { %418 = vmatpush.bf16.msra.mxu3 %v636_v28 }
  0x28   :  { %390 = vmatpush.bf16.msra.mxu1 %v620_v29 }
  0x29   :  { %377 = vmatpush.bf16.msra.mxu0 %v611_v31 }
  0x2a   :  { %405 = vmatpush.bf16.msra.mxu2 %v627_v32 }
  0x2b   :  { %419 = vmatpush.bf16.msra.mxu3 %v635_v37 }
  0x2c   :  { %391 = vmatpush.bf16.msra.mxu1 %v619_v41  ;;  %378 = vmatmul.bf16.vlgmr.msra.gmra.mxu0 %v58_v44 }
  0x2d   :  { %429 = vmatpush.bf16.msrb.mxu0 %v368_v40  ;;  %406 = vmatmul.bf16.vlgmr.msra.gmra.mxu2 %v60_v45 }
  0x2e   :  { %420 = vmatmul.bf16.vlgmr.msra.gmra.mxu3 %v61_v46 }
  0x2f   :  { %392 = vmatmul.bf16.vlgmr.msra.gmra.mxu1 %v59_v47 }
  0x31   :  { %430 = vmatpush.bf16.msrb.mxu0 %v646_v48 }
  0x35   :  { %431 = vmatpush.bf16.msrb.mxu0 %v645_v49 }
  0x39   :  { %432 = vmatpush.bf16.msrb.mxu0 %v644_v50 }
  0x3d   :  { %433 = vmatpush.bf16.msrb.mxu0 %v643_v51 }
  0x40   :  { %610 = vmatmul.msk.bf16.vlgmr.msrb.gmra.mxu0 %vm362_vm1, %v62_v54 }
  0xa9   :  { %v379_v56 = vpop.f32.mrf.mxu0 }
  0xaa   :  { %v380_v57 = vadd.f32 %v657_v55, %v379_v56 }
  0xac   :  { %v393_v58 = vpop.f32.mrf.mxu1 }
  0xad   :  { %v394_v60 = vadd.f32 %v393_v58, %v380_v57 }
  0xb0   :  { %v407_v59 = vpop.f32.mrf.mxu2 }
  0xb1   :  { %v381_v61 = vpop.f32.mrf.mxu0  ;;  %v421_v62 = vpop.f32.mrf.mxu3  ;;  %v408_v63 = vadd.f32 %v407_v59, %v394_v60 }
  0xb2   :  { %v382_v0 = vadd.f32 %v657_v55, %v381_v61 }
  0xb3   :  { %v422_v2 = vadd.f32 %v421_v62, %v408_v63 }
  0xb4   :  { %v395_v1 = vpop.f32.mrf.mxu1 }
  0xb5   :  { %v396_v5 = vadd.f32 %v395_v1, %v382_v0 }
  0xb8   :  { %v409_v3 = vpop.f32.mrf.mxu2 }
  0xb9   :  { %v410_v7 = vadd.f32 %v409_v3, %v396_v5  ;;  %v423_v8 = vpop.f32.mrf.mxu3 }
  0xbb   :  { %v424_v9 = vadd.f32 %v423_v8, %v410_v7 }
  0xbd   :  { %v435_v4 = vpop.f32.mrf.mxu0 }
  0xbe   :  { %v436_v6 = vadd.f32 %v435_v4, %v422_v2 }
  0xc0   :  { %440 = vst [vmem:[#allocation7] sm:$0xff] %v436_v6 }
  0xc5   :  { %v437_v10 = vpop.f32.mrf.mxu0 }
  0xc6   :  { %v438_v11 = vadd.f32 %v437_v10, %v424_v9 }
  0xc8   :  { %441 = vst [vmem:[#allocation7 + $0x8] sm:$0xff] %v438_v11 }
  0xc9   :  { %454 = dma.vmem_to_hbm [thread:$0]  %s447_s2, 256, %s449_s29, [#allocation4], %s743_s30, %s743_s30, %s744_s4  }
  0xca   :  { %734 = dma.done.wait [#allocation4], 256  }
  0xcb   :  { %735 = vsyncadd [#allocation4], 4294967040 }
  0xcc   :  { %459 = vsyncpa [#allocation3], 1 }
  0xcd   :  { %460 = vsyncpa [#allocation6], 1 }
  0xce   :  { %461 = vsyncpa [#allocation4], 1 }

</bundles_post_ra>
